<compile_context>
chip_gen: v7x
topology: tpu7x:2x2x1
jax: 0.10.0
libtpu: 0.0.40
codegen_flags: <defaults>
</compile_context>

<pallas_src>
import functools

import jax
import jax.numpy as jnp
from jax.experimental import pallas as pl
from jax.experimental.pallas import tpu as pltpu


# ---------------------------------------------------------------------------
# Kernel 1: fused feature-difference + batch-mean -> (G_pad, D) f32 row matrix
# ---------------------------------------------------------------------------
def fmean_kernel(ft_ref, fs_ref, out_ref, *, n_groups, batch, g_pad):
    # ft_ref / fs_ref: (G*B, D) group-major stacked features (2 DMAs total).
    diff = ft_ref[...] - fs_ref[...]                      # f32 VPU subtract
    inv_b = 1.0 / batch
    rows = []
    for g in range(n_groups):                             # static unroll, G small
        rows.append(jnp.sum(diff[g * batch:(g + 1) * batch, :],
                            axis=0, keepdims=True) * inv_b)
    if g_pad > n_groups:                                  # pad rows to sublane multiple
        rows.append(jnp.zeros((g_pad - n_groups, diff.shape[1]), jnp.float32))
    out_ref[...] = jnp.concatenate(rows, axis=0)          # (G_pad, D)


# ---------------------------------------------------------------------------
# Kernel 2: streaming block-matvec over output-column tiles (weight-BW bound)
# ---------------------------------------------------------------------------
def hyper_matvec_kernel(gid_ref, fmean_ref, w_ref, b_ref, out_ref):
    j = pl.program_id(0)
    g = gid_ref[j]                                        # SMEM scalar: group of this tile
    # (1, D) f_mean row for this tile's group; bf16 only at the MXU operands.
    f_row = fmean_ref[pl.ds(g, 1), :].astype(jnp.bfloat16)
    out_ref[...] = (jnp.dot(f_row, w_ref[...],            # (1, TN) f32 accumulation
                            preferred_element_type=jnp.float32)
                    + b_ref[...])                         # lane-dense unmasked store


# ---------------------------------------------------------------------------
# Wrapper
# ---------------------------------------------------------------------------
def hyper_module_forward(f_tgt_stack, f_src_stack, w_dense, b_dense, group_ids,
                         col_offsets, col_sizes, *, n_groups, batch, tile_n):
    """f_tgt_stack / f_src_stack: (G*B, D) f32 encoded [shape|attribute|style]
    features, group-major.  w_dense: (D, O_pad) bf16 per-group weights laid out
    side-by-side, each group padded to a multiple of tile_n (pad cols zero).
    b_dense: (1, O_pad) f32.  group_ids: (n_tiles,) int32.  Returns (o_total,)
    f32 == torch.mean(delta, dim=0)."""
    d = w_dense.shape[0]
    o_pad = w_dense.shape[1]
    n_tiles = o_pad // tile_n
    assert n_tiles * tile_n == o_pad and group_ids.shape[0] == n_tiles
    g_pad = pl.cdiv(n_groups, 8) * 8
    vmem = pl.BlockSpec(memory_space=pltpu.MemorySpace.VMEM)

    # Stage 1: f_mean rows, computed once (mean folded before the matmul —
    # exact only because the head is purely linear, n_layer=1).
    fmean = pl.pallas_call(
        functools.partial(fmean_kernel, n_groups=n_groups, batch=batch, g_pad=g_pad),
        out_shape=jax.ShapeDtypeStruct((g_pad, d), jnp.float32),
        in_specs=[vmem, vmem],
        out_specs=vmem,
    )(f_tgt_stack, f_src_stack)

    # Stage 2: stream bf16 weight column tiles through the MXU.
    cost = pl.CostEstimate(
        flops=2 * d * o_pad,
        transcendentals=0,
        bytes_accessed=int(w_dense.size * 2 + b_dense.size * 4
                           + fmean.size * 4 + o_pad * 4),
    )
    out = pl.pallas_call(
        hyper_matvec_kernel,
        out_shape=jax.ShapeDtypeStruct((1, o_pad), jnp.float32),
        grid_spec=pltpu.PrefetchScalarGridSpec(
            num_scalar_prefetch=1,
            grid=(n_tiles,),
            in_specs=[
                pl.BlockSpec((g_pad, d), lambda j, gid: (0, 0)),    # f_mean, VMEM-resident
                pl.BlockSpec((d, tile_n), lambda j, gid: (0, j)),   # bf16 weight stream
                pl.BlockSpec((1, tile_n), lambda j, gid: (0, j)),   # bias tile
            ],
            out_specs=pl.BlockSpec((1, tile_n), lambda j, gid: (0, j)),
        ),
        compiler_params=pltpu.CompilerParams(
            dimension_semantics=("parallel",),   # v7x: 2 TCs split the column tiles
        ),
        cost_estimate=cost,
    )(group_ids, fmean, w_dense, b_dense)

    # Drop each group's zero-padded tail columns -> torch.cat([...], dim=1) layout.
    parts = [out[0, off:off + size] for off, size in zip(col_offsets, col_sizes)]
    return jnp.concatenate(parts, axis=0)


# ---------------------------------------------------------------------------
# Parameter construction helpers
# ---------------------------------------------------------------------------
def make_group_params(key, in_feat, out_sizes):
    """One HyperNetwork (n_layer=1): one Linear(in_feat, out_i) per module,
    fused along output columns.  Returns W (in_feat, sum(out_sizes)), b (1, ...)."""
    ks = jax.random.split(key, 2 * len(out_sizes))
    ws, bs = [], []
    for i, o in enumerate(out_sizes):
        ws.append(jax.random.normal(ks[2 * i], (in_feat, o), jnp.float32) * 0.02)
        bs.append(jax.random.normal(ks[2 * i + 1], (1, o), jnp.float32) * 0.02)
    return jnp.concatenate(ws, axis=1), jnp.concatenate(bs, axis=1)


def build_dense_weights(ws, bs, tile_n):
    """Concatenate the per-group weights along columns, padding each group to a
    multiple of tile_n so no column tile straddles two groups (no 3x zero
    block-diagonal inflation).  Padding columns are exactly zero.  Returns bf16
    weight (D, O_pad), f32 bias (1, O_pad), int32 per-tile group ids, and the
    valid-column (offset, size) of every group."""
    d = ws[0].shape[0]
    sizes = [w.shape[1] for w in ws]
    padded = [pl.cdiv(o, tile_n) * tile_n for o in sizes]
    o_pad = sum(padded)
    w_dense = jnp.zeros((d, o_pad), jnp.float32)
    b_dense = jnp.zeros((1, o_pad), jnp.float32)
    group_ids, offsets = [], []
    off = 0
    for g, (w, b) in enumerate(zip(ws, bs)):
        og = sizes[g]
        w_dense = w_dense.at[:, off:off + og].set(w)
        b_dense = b_dense.at[:, off:off + og].set(b)
        offsets.append(off)
        group_ids += [g] * (padded[g] // tile_n)
        off += padded[g]
    return (w_dense.astype(jnp.bfloat16), b_dense,
            jnp.asarray(group_ids, jnp.int32), offsets, sizes)


if __name__ == "__main__":
    # Small synthetic generator config (g.renderer.network.*):
    #   8 pts_linears with in_ch=out_ch=8 -> 64 params each
    #   1 views_linears with in_ch=8, out_ch=4 -> 32 params
    parameters_per_layer = [8 * 8] * 8 + [8 * 4]
    group = [3, 3, 3]
    assert sum(group) == 9, 'need to match the total 9 modulated linear layers.'

    in_feat = 32     # encoder output dim (small stand-in for 512)
    batch = 2
    n_groups = len(group)
    tile_n = 256     # real config: >=512 on v5e/v6e, halved (or bf16-only) on v7x

    key = jax.random.PRNGKey(0)
    (k_fc_t, k_fc_s, k_fm_t, k_fm_s, k_ff_t, k_ff_s,
     k_c, k_m, k_f) = jax.random.split(key, 9)

    # encoded text features (encoder is external, see TODO at top)
    fc_tgt = jax.random.normal(k_fc_t, (batch, in_feat), jnp.float32)
    fc_src = jax.random.normal(k_fc_s, (batch, in_feat), jnp.float32)
    fm_tgt = jax.random.normal(k_fm_t, (batch, in_feat), jnp.float32)
    fm_src = jax.random.normal(k_fm_s, (batch, in_feat), jnp.float32)
    ff_tgt = jax.random.normal(k_ff_t, (batch, in_feat), jnp.float32)
    ff_src = jax.random.normal(k_ff_s, (batch, in_feat), jnp.float32)

    # HyperNetwork parameters (coarse / medium / fine groups), fused per group
    wc, bc = make_group_params(k_c, in_feat, parameters_per_layer[:group[0]])
    wm, bm = make_group_params(k_m, in_feat, parameters_per_layer[group[0]:sum(group[:2])])
    wf, bf = make_group_params(k_f, in_feat, parameters_per_layer[sum(group[:2]):])

    w_dense, b_dense, group_ids, col_offsets, col_sizes = build_dense_weights(
        [wc, wm, wf], [bc, bm, bf], tile_n)

    # Group-major stacked features: 2 input DMAs instead of 6.
    f_tgt_stack = jnp.concatenate([fc_tgt, fm_tgt, ff_tgt], axis=0)   # (G*B, D)
    f_src_stack = jnp.concatenate([fc_src, fm_src, ff_src], axis=0)   # (G*B, D)

    delta_mean = hyper_module_forward(
        f_tgt_stack, f_src_stack, w_dense, b_dense, group_ids,
        col_offsets, col_sizes, n_groups=n_groups, batch=batch, tile_n=tile_n)
    jax.block_until_ready(delta_mean)

    # pure-JAX f32 reference (original op order: per-group dot -> concat -> mean)
    def ref():
        d = jnp.concatenate([(fc_tgt - fc_src) @ wc + bc,
                             (fm_tgt - fm_src) @ wm + bm,
                             (ff_tgt - ff_src) @ wf + bf], axis=1)
        return jnp.mean(d, axis=0)

    expected = ref()
    assert delta_mean.shape == (sum(parameters_per_layer),)
    # Tolerance relaxed vs the f32 reference because weights are stored in bf16.
    assert jnp.allclose(delta_mean, expected, atol=1e-2, rtol=2e-2), \
        float(jnp.max(jnp.abs(delta_mean - expected)))
    print("KERNEL_OK")
</pallas_src>

<mosaic_0001>
module attributes {stable_mosaic.version = 11 : i64} {
  func.func @fmean_kernel(%arg0: memref<6x32xf32, #tpu.memory_space<vmem>>, %arg1: memref<6x32xf32, #tpu.memory_space<vmem>>, %arg2: memref<8x32xf32, #tpu.memory_space<vmem>>) attributes {dimension_semantics = [], scalar_prefetch = 0 : i64, scratch_operands = 0 : i64, tpu.core_type = #tpu.core_type<tc>} {
    %c0 = arith.constant 0 : index
    %c0_0 = arith.constant 0 : index
    %0 = vector.load %arg0[%c0, %c0_0] : memref<6x32xf32, #tpu.memory_space<vmem>>, vector<6x32xf32>
    %c0_1 = arith.constant 0 : index
    %c0_2 = arith.constant 0 : index
    %1 = vector.load %arg1[%c0_1, %c0_2] : memref<6x32xf32, #tpu.memory_space<vmem>>, vector<6x32xf32>
    %2 = arith.subf %0, %1 : vector<6x32xf32>
    %3 = vector.extract_strided_slice %2 {offsets = [0, 0], sizes = [2, 32], strides = [1, 1]} : vector<6x32xf32> to vector<2x32xf32>
    %cst = arith.constant dense<0.000000e+00> : vector<32xf32>
    %4 = vector.multi_reduction <add>, %3, %cst [0] : vector<2x32xf32> to vector<32xf32>
    %5 = vector.shape_cast %4 : vector<32xf32> to vector<1x32xf32>
    %cst_3 = arith.constant 5.000000e-01 : f32
    %6 = vector.broadcast %cst_3 : f32 to vector<1x32xf32>
    %7 = arith.mulf %5, %6 : vector<1x32xf32>
    %8 = vector.extract_strided_slice %2 {offsets = [2, 0], sizes = [2, 32], strides = [1, 1]} : vector<6x32xf32> to vector<2x32xf32>
    %cst_4 = arith.constant dense<0.000000e+00> : vector<32xf32>
    %9 = vector.multi_reduction <add>, %8, %cst_4 [0] : vector<2x32xf32> to vector<32xf32>
    %10 = vector.shape_cast %9 : vector<32xf32> to vector<1x32xf32>
    %cst_5 = arith.constant 5.000000e-01 : f32
    %11 = vector.broadcast %cst_5 : f32 to vector<1x32xf32>
    %12 = arith.mulf %10, %11 : vector<1x32xf32>
    %13 = vector.extract_strided_slice %2 {offsets = [4, 0], sizes = [2, 32], strides = [1, 1]} : vector<6x32xf32> to vector<2x32xf32>
    %cst_6 = arith.constant dense<0.000000e+00> : vector<32xf32>
    %14 = vector.multi_reduction <add>, %13, %cst_6 [0] : vector<2x32xf32> to vector<32xf32>
    %15 = vector.shape_cast %14 : vector<32xf32> to vector<1x32xf32>
    %cst_7 = arith.constant 5.000000e-01 : f32
    %16 = vector.broadcast %cst_7 : f32 to vector<1x32xf32>
    %17 = arith.mulf %15, %16 : vector<1x32xf32>
    %cst_8 = arith.constant 0.000000e+00 : f32
    %18 = vector.broadcast %cst_8 : f32 to vector<5x32xf32>
    %19 = tpu.concatenate %7, %12, %17, %18 in 0 : vector<1x32xf32>, vector<1x32xf32>, vector<1x32xf32>, vector<5x32xf32> -> vector<8x32xf32>
    %c0_9 = arith.constant 0 : index
    %c0_10 = arith.constant 0 : index
    %20 = vector.load %arg2[%c0_9, %c0_10] : memref<8x32xf32, #tpu.memory_space<vmem>>, vector<8x32xf32>
    tpu.vector_store %arg2[%c0_9, %c0_10], %19 {strides = array<i32>} : memref<8x32xf32, #tpu.memory_space<vmem>>, vector<8x32xf32>,
    return
  }
}

</mosaic_0001>

<bundles_post_ra>
// kernel: tpu_custom_call.1
= control target key start
LH: loop header
LB: loop body
LE: loop exit
PB: predicated region body
PF: predicated region fallthrough
CT: control target
= control target key end

     0   :  { %7 = vsyncpa [#allocation3], 0  ;;  %s222_s0 = inlined_call_operand.hbm [shape: f32[6,32], index: 0, kind: input, shape index: {}]   ;;  %s223_s1 = inlined_call_operand.hbm [shape: f32[6,32], index: 1, kind: input, shape index: {}]   ;;  %s224_s2 = inlined_call_operand.hbm [shape: f32[8,32], index: 2, kind: output, shape index: {}]  }
   0x1   :  { %8 = vsyncpa [#allocation6], 0 }
   0x2   :  { %9 = vsyncpa [#allocation4], 0  ;;  %s168_s9 = smov [#allocation2]   ;;  %s169_s11 = smov [#allocation5]  }
   0x3   :  { %s16_s10 = sshll.u32 %s168_s9, 4  ;;  %s26_s12 = sshll.u32 %s169_s11, 4  ;;  %s17_s10 = int_to_ptr.vmem [resolvable:$true] %s16_s10  ;;  %s27_s12 = int_to_ptr.vmem [resolvable:$true] %s26_s12 }
   0x4   :  { %s96_s15 = scalar_lea.hbm %s222_s0, 128 }
   0x5   :  { %p97_p0 = scmp.ne.s32.totalorder %s222_s0, %s96_s15  ;;  %p100_p1 = scmp.lt.u32.totalorder %s96_s15, %s222_s0 }
   0x7   :  { %p102_p2 = pnand %p100_p1, %p97_p0 }
   0x9   :  { %105 = shalt.err (!%p102_p2)
}
   0xa   :  { %s106_s20 = scalar_lea.vmem %s17_s10, 128  ;;  %p111_p4 = scmp.lt.s32.totalorder %s17_s10, %s17_s10 }
   0xb   :  { %p107_p3 = scmp.ne.s32.totalorder %s17_s10, %s106_s20  ;;  %p112_p5 = scmp.lt.s32.totalorder %s106_s20, %s106_s20 }
   0xd   :  { %p113_p6 = por %p112_p5, %p111_p4 }
   0xf   :  { %p114_p7 = pnand %p113_p6, %p107_p3 }
  0x11   :  { %117 = shalt.err (!%p114_p7)
}
  0x12   :  { %19 = dma.hbm_to_vmem [thread:$0]  %s222_s0, 128, %s17_s10, [#allocation3]  }
  0x13   :  { %s118_s25 = scalar_lea.hbm %s223_s1, 128 }
  0x14   :  { %p119_p8 = scmp.ne.s32.totalorder %s223_s1, %s118_s25  ;;  %p122_p9 = scmp.lt.u32.totalorder %s118_s25, %s223_s1 }
  0x16   :  { %p124_p10 = pnand %p122_p9, %p119_p8 }
  0x18   :  { %127 = shalt.err (!%p124_p10)
}
  0x19   :  { %s128_s30 = scalar_lea.vmem %s27_s12, 128  ;;  %p133_p12 = scmp.lt.s32.totalorder %s27_s12, %s27_s12 }
  0x1a   :  { %p129_p11 = scmp.ne.s32.totalorder %s27_s12, %s128_s30  ;;  %p134_p13 = scmp.lt.s32.totalorder %s128_s30, %s128_s30 }
  0x1c   :  { %p135_p0 = por %p134_p13, %p133_p12 }
  0x1e   :  { %p136_p1 = pnand %p135_p0, %p129_p11 }
  0x20   :  { %139 = shalt.err (!%p136_p1)
}
  0x21   :  { %29 = dma.hbm_to_vmem [thread:$0]  %s223_s1, 128, %s27_s12, [#allocation6]  }
  0x22   :  { %162 = dma.done.wait [#allocation3], 128  }
  0x23   :  { %163 = vsyncadd [#allocation3], 4294967168 }
  0x24   :  { %164 = dma.done.wait [#allocation6], 128  }
  0x25   :  { %165 = vsyncadd [#allocation6], 4294967168  ;;  %v36_v0 = vld [vmem:[#allocation2] sm:$0x3f]  ;;  %v37_v1 = vld [vmem:[#allocation5] sm:$0x3f] }
  0x26   :  { %vm39_vm0 = vcmask 254976   ;;  %v38_v2 = vsub.f32 %v36_v0, %v37_v1  ;;  %vm69_vm1 = vcmask 1040384   ;;  %vm71_vm2 = vcmask 1041408   ;;  %s170_s1 = smov [#allocation7]  }
  0x27   :  { %s83_s4 = sshll.u32 %s170_s1, 4  ;;  %vm73_vm3 = vcmask 1042432   ;;  %vm75_vm4 = vcmask 261120   ;;  %s84_s4 = int_to_ptr.vmem [resolvable:$true] %s83_s4 }
  0x28   :  { %v40_v3 = vsel %vm39_vm0, %v38_v2, 0.0  ;;  %v49_v4 = vrot.slane %v38_v2, 2  ;;  %v59_v5 = vrot.slane %v38_v2, 4  ;;  %s140_s5 = scalar_lea.vmem %s84_s4, 128  ;;  %p145_p3 = scmp.lt.s32.totalorder %s84_s4, %s84_s4 }
  0x29   :  { %v41_v6 = vrot.slane %v40_v3, 4  ;;  %p141_p2 = scmp.ne.s32.totalorder %s84_s4, %s140_s5  ;;  %p146_p4 = scmp.lt.s32.totalorder %s140_s5, %s140_s5 }
  0x2a   :  { %v51_v7 = vsel %vm39_vm0, %v49_v4, 0.0  ;;  %v61_v8 = vsel %vm39_vm0, %v59_v5, 0.0 }
  0x2b   :  { %v42_v9 = vadd.f32 %v41_v6, %v40_v3  ;;  %v52_v10 = vrot.slane %v51_v7, 4  ;;  %v62_v11 = vrot.slane %v61_v8, 4  ;;  %p147_p5 = por %p146_p4, %p145_p3 }
  0x2d   :  { %v43_v12 = vrot.slane %v42_v9, 2  ;;  %v53_v13 = vadd.f32 %v52_v10, %v51_v7  ;;  %v63_v14 = vadd.f32 %v62_v11, %v61_v8  ;;  %p148_p6 = pnand %p147_p5, %p141_p2 }
  0x2f   :  { %v44_v15 = vadd.f32 %v43_v12, %v42_v9  ;;  %v54_v16 = vrot.slane %v53_v13, 2  ;;  %v64_v17 = vrot.slane %v63_v14, 2 }
  0x31   :  { %v45_v18 = vrot.slane %v44_v15, 1  ;;  %v55_v19 = vadd.f32 %v54_v16, %v53_v13  ;;  %v65_v20 = vadd.f32 %v64_v17, %v63_v14 }
  0x33   :  { %v46_v21 = vadd.f32 %v45_v18, %v44_v15  ;;  %v56_v22 = vrot.slane %v55_v19, 1  ;;  %v66_v23 = vrot.slane %v65_v20, 1 }
  0x35   :  { %v47_v24 = vmul.f32 0.5, %v46_v21  ;;  %v57_v25 = vadd.f32 %v56_v22, %v55_v19  ;;  %v67_v26 = vadd.f32 %v66_v23, %v65_v20 }
  0x37   :  { %v58_v27 = vmul.f32 0.5, %v57_v25  ;;  %v68_v28 = vmul.f32 0.5, %v67_v26 }
  0x39   :  { %v70_v29 = vsel %vm69_vm1, %v47_v24, %v58_v27 }
  0x3a   :  { %v72_v30 = vsel %vm71_vm2, %v70_v29, %v68_v28 }
  0x3b   :  { %v74_v31 = vsel %vm73_vm3, %v72_v30, 0.0 }
  0x3c   :  { %76 = vst.msk [vmem:[#allocation7] sm:$0xff] %vm75_vm4, %v74_v31 }
  0x3d   :  { %151 = shalt.err (!%p148_p6)
}
  0x3e   :  { %s152_s8 = scalar_lea.hbm %s224_s2, 128 }
  0x3f   :  { %p153_p7 = scmp.ne.s32.totalorder %s224_s2, %s152_s8  ;;  %p156_p8 = scmp.lt.u32.totalorder %s152_s8, %s224_s2 }
  0x41   :  { %p158_p9 = pnand %p156_p8, %p153_p7 }
  0x43   :  { %161 = shalt.err (!%p158_p9)
}
  0x44   :  { %86 = dma.vmem_to_hbm [thread:$0]  %s84_s4, 128, %s224_s2, [#allocation4]  }
  0x45   :  { %166 = dma.done.wait [#allocation4], 128  }
  0x46   :  { %167 = vsyncadd [#allocation4], 4294967168 }
  0x47   :  { %90 = vsyncpa [#allocation3], 1 }
  0x48   :  { %91 = vsyncpa [#allocation6], 1 }
  0x49   :  { %92 = vsyncpa [#allocation4], 1 }

</bundles_post_ra>
